<compile_context>
chip_gen: v7x
topology: tpu7x:2x2x1
jax: 0.10.0
libtpu: 0.0.40
codegen_flags: <defaults>
</compile_context>

<pallas_src>
import functools

import jax
import jax.numpy as jnp
from jax import lax
from jax.experimental import pallas as pl
from jax.experimental.pallas import tpu as pltpu


def _round_up(x, m):
    return (x + m - 1) // m * m


def _cdiv(a, b):
    return (a + b - 1) // b


# ---------------------------------------------------------------------------
# Kernels
# ---------------------------------------------------------------------------
def _linear_kernel_single_k(x_ref, w_ref, b_ref, o_ref, *, precision):
    # x_ref: (tm, K)  w_ref: (K, tn)  b_ref: (1, tn)  o_ref: (tm, tn)
    acc = jnp.dot(
        x_ref[...], w_ref[...],
        preferred_element_type=jnp.float32, precision=precision,
    )
    o_ref[...] = (acc + b_ref[...].astype(jnp.float32)).astype(o_ref.dtype)


def _linear_kernel_multi_k(x_ref, w_ref, b_ref, o_ref, acc_ref, *, precision):
    # x_ref: (tm, tk)  w_ref: (tk, tn)  b_ref: (1, tn)  o_ref/acc_ref: (tm, tn)
    k = pl.program_id(2)

    @pl.when(k == 0)
    def _init():
        acc_ref[...] = jnp.zeros_like(acc_ref)

    acc_ref[...] += jnp.dot(
        x_ref[...], w_ref[...],
        preferred_element_type=jnp.float32, precision=precision,
    )

    @pl.when(k == pl.num_programs(2) - 1)
    def _finalize():
        o_ref[...] = (acc_ref[...] + b_ref[...].astype(jnp.float32)).astype(o_ref.dtype)


# ---------------------------------------------------------------------------
# Wrapper
# ---------------------------------------------------------------------------
@functools.partial(jax.jit, static_argnames=("input_dim",))
def linear_forward(x, weight_t, bias, *, input_dim):
    """Replicates Linear.forward.

    x:        any shape whose total size is a multiple of input_dim
    weight_t: (input_dim, num_classes)  -- PyTorch weight.T, stored once at init
    bias:     (num_classes,)
    """
    num_classes = weight_t.shape[1]

    # torch: x.view(-1, input_dim)
    x2d = x.reshape(-1, input_dim)
    batch = x2d.shape[0]
    dtype = x2d.dtype
    itemsize = jnp.dtype(dtype).itemsize

    # f32 inputs: exact MXU passes to match a PyTorch f32 Linear.  For max
    # throughput (v5e especially) pass bf16 activations/weights instead.
    precision = lax.Precision.HIGHEST if dtype == jnp.float32 else None

    # ---- tile sizes (budgeted for v7x's 64 MiB/TC VMEM; fits v5e/v6e too) --
    max_tile_k = 2048 if itemsize >= 4 else 4096   # single-K-block threshold

    # N tile: whole N when it fits (block dim == full dim -> no constraint, no
    # padding, exact bias); otherwise 512-wide lane-dense blocks with a
    # masked ragged edge block.
    tn = num_classes if num_classes <= 512 else 512
    grid_n = _cdiv(num_classes, tn)

    # M tile: whole M when small; when N has a single block, split M into >=2
    # blocks so both v7x TensorCores get work.
    if batch > 512:
        tm = 512
    elif grid_n == 1 and batch >= 256:
        tm = _round_up(_cdiv(batch, 2), 8)          # 2 M blocks -> megacore
    else:
        tm = batch                                   # single block == full dim
    grid_m = _cdiv(batch, tm)

    bias_2d = bias.reshape(1, num_classes)

    if input_dim <= max_tile_k:
        # ---- fast path: whole K in one block, no accumulator, no K axis ----
        kp = input_dim
        x_in, w_in = x2d, weight_t
        grid = (grid_m, grid_n)
        kernel = functools.partial(_linear_kernel_single_k, precision=precision)
        in_specs = [
            pl.BlockSpec((tm, input_dim), lambda i, j: (i, 0)),   # x tile (M,K)
            pl.BlockSpec((input_dim, tn), lambda i, j: (0, j)),   # W tile (K,N)
            pl.BlockSpec((1, tn), lambda i, j: (0, j)),           # bias tile
        ]
        out_spec = pl.BlockSpec((tm, tn), lambda i, j: (i, j))
        scratch = []
        dim_sem = ("parallel", "parallel")
    else:
        # ---- general path: K grid axis + resident f32 accumulator ---------
        tk = max_tile_k
        kp = _round_up(input_dim, tk)
        # K MUST be zero-padded here: garbage K columns would feed the
        # reduction and corrupt real outputs.
        # TODO(synk): pad weight_t along K once at parameter-creation time.
        x_in = jnp.pad(x2d, ((0, 0), (0, kp - input_dim)))
        w_in = jnp.pad(weight_t, ((0, kp - input_dim), (0, 0)))
        grid = (grid_m, grid_n, kp // tk)
        kernel = functools.partial(_linear_kernel_multi_k, precision=precision)
        in_specs = [
            pl.BlockSpec((tm, tk), lambda i, j, k: (i, k)),       # x tile (M,K)
            pl.BlockSpec((tk, tn), lambda i, j, k: (k, j)),       # W tile (K,N)
            pl.BlockSpec((1, tn), lambda i, j, k: (0, j)),        # bias tile
        ]
        out_spec = pl.BlockSpec((tm, tn), lambda i, j, k: (i, j))
        scratch = [pltpu.VMEM((tm, tn), jnp.float32)]
        dim_sem = ("parallel", "parallel", "arbitrary")

    # Advisory cost estimate: account for re-reads under the tiling
    # (x is read grid_n times, W and bias grid_m times; output written once).
    cost = pl.CostEstimate(
        flops=2 * batch * input_dim * num_classes,
        transcendentals=0,
        bytes_accessed=itemsize * (
            batch * kp * grid_n
            + kp * num_classes * grid_m
            + num_classes * grid_m
            + batch * num_classes
        ),
    )

    out = pl.pallas_call(
        kernel,
        out_shape=jax.ShapeDtypeStruct((batch, num_classes), dtype),
        grid_spec=pltpu.PrefetchScalarGridSpec(
            num_scalar_prefetch=0,
            grid=grid,
            in_specs=in_specs,
            out_specs=out_spec,
            scratch_shapes=scratch,
        ),
        compiler_params=pltpu.CompilerParams(
            dimension_semantics=dim_sem,
            vmem_limit_bytes=48 * 1024 * 1024,
        ),
        cost_estimate=cost,
    )(x_in, w_in, bias_2d)

    # torch: squeeze(..., 0) twice -- only has an effect when batch == 1
    if batch == 1:
        out = jnp.squeeze(out, axis=0)
    return out


def init_linear_params(key, input_dim, num_classes, dtype=jnp.float32):
    """nn.Linear-style init (uniform +/- 1/sqrt(fan_in)).

    Returns the weight already TRANSPOSED to (input_dim, num_classes), i.e.
    PyTorch `linear.weight.T`, stored once at parameter-creation time so the
    kernel never re-transposes it.
    """
    kw, kb = jax.random.split(key)
    bound = 1.0 / (input_dim ** 0.5)
    weight_t = jax.random.uniform(
        kw, (input_dim, num_classes), dtype=dtype, minval=-bound, maxval=bound
    )
    bias = jax.random.uniform(
        kb, (num_classes,), dtype=dtype, minval=-bound, maxval=bound
    )
    return weight_t, bias


if __name__ == "__main__":
    key = jax.random.PRNGKey(0)
    kx, kp = jax.random.split(key)

    input_dim = 32
    num_classes = 16

    # Example input: (2, 4, 32) -- view(-1, input_dim) flattens it to (8, 32).
    x = jax.random.normal(kx, (2, 4, input_dim), dtype=jnp.float32)
    weight_t, bias = init_linear_params(kp, input_dim, num_classes)

    out = linear_forward(x, weight_t, bias, input_dim=input_dim)
    jax.block_until_ready(out)

    # Sanity check against an exact-precision JAX reference.
    ref = jnp.dot(x.reshape(-1, input_dim), weight_t,
                  precision=lax.Precision.HIGHEST) + bias
    assert out.shape == (8, num_classes), out.shape
    assert jnp.allclose(out, ref, atol=1e-4, rtol=1e-4), float(
        jnp.max(jnp.abs(out - ref)))

    print("KERNEL_OK")
</pallas_src>

<mosaic_0001>
module attributes {stable_mosaic.version = 11 : i64} {
  func.func @_linear_kernel_single_k(%arg0: i32, %arg1: i32, %arg2: memref<8x32xf32, #tpu.memory_space<vmem>>, %arg3: memref<32x16xf32, #tpu.memory_space<vmem>>, %arg4: memref<1x16xf32, #tpu.memory_space<vmem>>, %arg5: memref<8x16xf32, #tpu.memory_space<vmem>>) attributes {dimension_semantics = [#tpu.dimension_semantics<parallel>, #tpu.dimension_semantics<parallel>], iteration_bounds = array<i64: 1, 1>, scalar_prefetch = 0 : i64, scratch_operands = 0 : i64, tpu.core_type = #tpu.core_type<tc>, window_params = [{transform_indices = @transform_0, window_bounds = array<i64: 8, 32>}, {transform_indices = @transform_1, window_bounds = array<i64: 32, 16>}, {transform_indices = @transform_2, window_bounds = array<i64: 1, 16>}, {transform_indices = @transform_3, window_bounds = array<i64: 8, 16>}]} {
    %c0 = arith.constant 0 : index
    %c0_0 = arith.constant 0 : index
    %0 = vector.load %arg2[%c0, %c0_0] : memref<8x32xf32, #tpu.memory_space<vmem>>, vector<8x32xf32>
    %c0_1 = arith.constant 0 : index
    %c0_2 = arith.constant 0 : index
    %1 = vector.load %arg3[%c0_1, %c0_2] : memref<32x16xf32, #tpu.memory_space<vmem>>, vector<32x16xf32>
    %cst = arith.constant dense<0.000000e+00> : vector<8x16xf32>
    %2 = tpu.matmul %0, %1, %cst {dimension_numbers = #tpu.dot_dimension_numbers<[1], [0], [0], [1], [0, 0, 1, 1], [], []>, precision = #tpu.contract_precision<fp32>} : vector<8x32xf32>, vector<32x16xf32>, vector<8x16xf32> -> vector<8x16xf32>
    %c0_3 = arith.constant 0 : index
    %c0_4 = arith.constant 0 : index
    %3 = vector.load %arg4[%c0_3, %c0_4] : memref<1x16xf32, #tpu.memory_space<vmem>>, vector<1x16xf32>
    %4 = vector.broadcast %3 : vector<1x16xf32> to vector<8x16xf32>
    %5 = arith.addf %2, %4 : vector<8x16xf32>
    %c0_5 = arith.constant 0 : index
    %c0_6 = arith.constant 0 : index
    %6 = vector.load %arg5[%c0_5, %c0_6] : memref<8x16xf32, #tpu.memory_space<vmem>>, vector<8x16xf32>
    tpu.vector_store %arg5[%c0_5, %c0_6], %5 {strides = array<i32>} : memref<8x16xf32, #tpu.memory_space<vmem>>, vector<8x16xf32>,
    return
  }
  func.func @transform_0(%arg0: i32, %arg1: i32) -> (i32, i32) {
    %c0_i32 = arith.constant 0 : i32
    %c0_i32_0 = arith.constant 0 : i32
    return %arg0, %c0_i32 : i32, i32
  }
  func.func @transform_1(%arg0: i32, %arg1: i32) -> (i32, i32) {
    %c0_i32 = arith.constant 0 : i32
    %c0_i32_0 = arith.constant 0 : i32
    return %c0_i32, %arg1 : i32, i32
  }
  func.func @transform_2(%arg0: i32, %arg1: i32) -> (i32, i32) {
    %c0_i32 = arith.constant 0 : i32
    %c0_i32_0 = arith.constant 0 : i32
    return %c0_i32, %arg1 : i32, i32
  }
  func.func @transform_3(%arg0: i32, %arg1: i32) -> (i32, i32) {
    %c0_i32 = arith.constant 0 : i32
    return %arg0, %arg1 : i32, i32
  }
}

</mosaic_0001>

<bundles_post_ra>
// kernel: linear_forward.1
= control target key start
LH: loop header
LB: loop body
LE: loop exit
PB: predicated region body
PF: predicated region fallthrough
CT: control target
= control target key end

     0   :  { %v703_v3 = vmov 0.0|0.0   ;;  %vm27_vm0 = vcmask 261120   ;;  %vm704_vm1 = vmmov 0   ;;  %v705_v10 = vmov 0.0   ;;  %s775_s0 = inlined_call_operand.vmem [shape: f32[8,32], index: 0, kind: input, shape index: {}]   ;;  %s776_s1 = inlined_call_operand.vmem [shape: f32[32,16], index: 1, kind: input, shape index: {}]   ;;  %s777_s2 = inlined_call_operand.vmem [shape: f32[1,16], index: 2, kind: input, shape index: {}]   ;;  %s778_s3 = inlined_call_operand.hbm [shape: f32[8,16], index: 3, kind: output, shape index: {}]  }
   0x1   :  { %v16_v0 = vld [vmem:[%s776_s1] sm:$0xff]  ;;  %v17_v1 = vld [vmem:[%s776_s1 + $0x8] sm:$0xff]  ;;  %v18_v2 = vld [vmem:[%s776_s1 + $0x10] sm:$0xff]  ;;  %629 = vmatprep.subr.bf16.mxu1 %v703_v3  ;;  %647 = vmatprep.subr.bf16.mxu0 %v703_v3 }
   0x2   :  { %v32_v4 = vand.u32 4294901760, %v16_v0  ;;  %v35_v5 = vand.u32 4294901760, %v17_v1  ;;  %v19_v6 = vld [vmem:[%s776_s1 + $0x18] sm:$0xff]  ;;  %v38_v7 = vand.u32 4294901760, %v18_v2  ;;  %v15_v8 = vld [vmem:[%s775_s0] sm:$0xff]  ;;  %571 = vmatprep.mubr.msk.f32.mxu1 %vm704_vm1, %v705_v10  ;;  %604 = vmatprep.mubr.msk.f32.mxu0 %vm704_vm1, %v705_v10 }
   0x3   :  { %v41_v9 = vand.u32 4294901760, %v19_v6  ;;  %v29_v11 = vsel %vm27_vm0, %v15_v8, 0 }
   0x4   :  { %8 = vsyncpa [#allocation3], 0  ;;  %v630_v12 = vpack.c.bf16 %v35_v5, %v32_v4  ;;  %v112_v13 = vsub.f32 %v16_v0, %v32_v4  ;;  %v119_v14 = vsub.f32 %v17_v1, %v35_v5  ;;  %v126_v15 = vsub.f32 %v18_v2, %v38_v7  ;;  %v532_v41 = vld [vmem:[%s777_s2] ss:$0 sm:$0xff]  ;;  %s706_s22 = smov [#allocation2]  }
   0x5   :  { %v133_v16 = vsub.f32 %v19_v6, %v41_v9  ;;  %v100_v17 = vand.u32 4294901760, %v29_v11  ;;  %v633_v18 = vpack.c.bf16 %v41_v9, %v38_v7  ;;  %s524_s23 = sshll.u32 %s706_s22, 4  ;;  %vm516_vm2 = vcmask 130048   ;;  %s525_s23 = int_to_ptr.vmem [resolvable:$true] %s524_s23 }
   0x6   :  { %631 = vmatpush3.bf16.msra.mxu1 %v630_v12  ;;  %649 = vmatpush3.bf16.msra.mxu0 %v630_v12  ;;  %v113_v19 = vand.u32 4294901760, %v112_v13  ;;  %v120_v20 = vand.u32 4294901760, %v119_v14  ;;  %v127_v21 = vand.u32 4294901760, %v126_v15  ;;  %v642_v39 = vpack.c.bf16 %v119_v14, %v112_v13  ;;  %s679_s24 = scalar_lea.vmem %s525_s23, 128  ;;  %p684_p1 = scmp.lt.s32.totalorder %s525_s23, %s525_s23 }
   0x7   :  { %632 = vmatprep.subr.bf16.mxu1 %v703_v3  ;;  %650 = vmatprep.subr.bf16.mxu0 %v703_v3  ;;  %v101_v22 = vsub.f32 %v29_v11, %v100_v17  ;;  %v134_v23 = vand.u32 4294901760, %v133_v16  ;;  %v645_v40 = vpack.c.bf16 %v133_v16, %v126_v15  ;;  %p680_p0 = scmp.ne.s32.totalorder %s525_s23, %s679_s24  ;;  %p685_p2 = scmp.lt.s32.totalorder %s679_s24, %s679_s24 }
   0x8   :  { %v114_v24 = vsub.f32 %v112_v13, %v113_v19  ;;  %v121_v25 = vsub.f32 %v119_v14, %v120_v20  ;;  %v128_v26 = vsub.f32 %v126_v15, %v127_v21  ;;  %v654_v31 = vpack.c.bf16 %v120_v20, %v113_v19 }
   0x9   :  { %v102_v27 = vand.u32 4294901760, %v101_v22  ;;  %v135_v28 = vsub.f32 %v133_v16, %v134_v23  ;;  %v657_v37 = vpack.c.bf16 %v134_v23, %v127_v21  ;;  %p686_p3 = por %p685_p2, %p684_p1 }
   0xa   :  { %634 = vmatpush3.bf16.msra.mxu1 %v633_v18  ;;  %652 = vmatpush3.bf16.msra.mxu0 %v633_v18  ;;  %v115_v29 = vand.u32 4294901760, %v114_v24  ;;  %v122_v30 = vand.u32 4294901760, %v121_v25  ;;  %v129_v34 = vand.u32 4294901760, %v128_v26 }
   0xb   :  { %v103_v32 = vsub.f32 %v101_v22, %v102_v27  ;;  %635 = vmatprep.subr.bf16.mxu1 %v703_v3  ;;  %653 = vmatprep.subr.bf16.mxu0 %v703_v3  ;;  %v136_v35 = vand.u32 4294901760, %v135_v28  ;;  %p687_p4 = pnand %p686_p3, %p680_p0 }
   0xc   :  { %v636_v33 = vpack.c.bf16 %v122_v30, %v115_v29 }
   0xd   :  { %v104_v36 = vand.u32 4294901760, %v103_v32  ;;  %605 = vmatmul.mubr.f32.vlgmr.msra.gmra.mrb[0].mxu0 %v102_v27  ;;  %v639_v38 = vpack.c.bf16 %v136_v35, %v129_v34 }
   0xe   :  { %655 = vmatpush3.bf16.msra.mxu0 %v654_v31  ;;  %615 = vmatprep.mubr.msk.f32.mxu0 %vm704_vm1, %v705_v10 }
   0xf   :  { %572 = vmatmul.mubr.f32.vlgmr.msra.gmra.mrb[0].mxu1 %v104_v36  ;;  %656 = vmatprep.subr.bf16.mxu0 %v703_v3 }
  0x10   :  { %637 = vmatpush3.bf16.msra.mxu1 %v636_v33  ;;  %582 = vmatprep.mubr.msk.f32.mxu1 %vm704_vm1, %v705_v10 }
  0x11   :  { %638 = vmatprep.subr.bf16.mxu1 %v703_v3 }
  0x12   :  { %658 = vmatpush3.bf16.msra.mxu0 %v657_v37 }
  0x13   :  { %659 = vmatprep.subr.bf16.mxu0 %v703_v3 }
  0x14   :  { %640 = vmatpush3.bf16.msra.mxu1 %v639_v38 }
  0x15   :  { %641 = vmatprep.subr.bf16.mxu1 %v703_v3  ;;  %616 = vmatmul.mubr.f32.vlgmr.msra.gmra.mrb[0].mxu0 %v100_v17 }
  0x16   :  { %661 = vmatpush3.bf16.msra.mxu0 %v630_v12  ;;  %626 = vmatprep.mubr.msk.f32.mxu0 %vm704_vm1, %v705_v10 }
  0x17   :  { %583 = vmatmul.mubr.f32.vlgmr.msra.gmra.mrb[0].mxu1 %v100_v17  ;;  %662 = vmatprep.subr.bf16.mxu0 %v703_v3 }
  0x18   :  { %643 = vmatpush3.bf16.msra.mxu1 %v642_v39  ;;  %593 = vmatprep.mubr.msk.f32.mxu1 %vm704_vm1, %v705_v10 }
  0x19   :  { %644 = vmatprep.subr.bf16.mxu1 %v703_v3 }
  0x1a   :  { %664 = vmatpush3.bf16.msra.mxu0 %v633_v18 }
  0x1c   :  { %646 = vmatpush3.bf16.msra.mxu1 %v645_v40 }
  0x1d   :  { %627 = vmatmul.mubr.f32.vlgmr.msra.gmra.mrb[0].mxu0 %v100_v17 }
  0x1f   :  { %594 = vmatmul.mubr.f32.vlgmr.msra.gmra.mrb[0].mxu1 %v101_v22 }
  0xf0   :  { %v512_v42 = vpop.f32.mrb[0].mxu0 }
  0xf1   :  { %v628_v43 = vpop.f32.mrb[1].mxu0 }
  0xf2   :  { %v277_v44 = vpop.f32.mrb[0].mxu1 }
  0xf3   :  { %v665_v45 = vadd.f32 %v532_v41, %v277_v44  ;;  %v595_v46 = vpop.f32.mrb[1].mxu1 }
  0xf5   :  { %v666_v47 = vadd.f32 %v665_v45, %v512_v42 }
  0xf7   :  { %517 = vst.msk [vmem:[#allocation2] sm:$0xff] %vm516_vm2, %v666_v47 }
  0xf8   :  { %690 = shalt.err (!%p687_p4)
}
  0xf9   :  { %s691_s26 = scalar_lea.hbm %s778_s3, 128 }
  0xfa   :  { %p692_p5 = scmp.ne.s32.totalorder %s778_s3, %s691_s26  ;;  %p695_p6 = scmp.lt.u32.totalorder %s691_s26, %s778_s3 }
  0xfc   :  { %p697_p7 = pnand %p695_p6, %p692_p5 }
  0xfe   :  { %700 = shalt.err (!%p697_p7)
}
  0xff   :  { %527 = dma.vmem_to_hbm [thread:$0]  %s525_s23, 128, %s778_s3, [#allocation3]  }
 0x100   :  { %701 = dma.done.wait [#allocation3], 128  }
 0x101   :  { %702 = vsyncadd [#allocation3], 4294967168 }
 0x102   :  { %531 = vsyncpa [#allocation3], 1 }

</bundles_post_ra>
